<compile_context>
chip_gen: v7x
topology: tpu7x:2x2x1
jax: 0.10.0
libtpu: 0.0.40
codegen_flags: <defaults>
</compile_context>

<pallas_src>
import functools

import jax
import jax.numpy as jnp
from jax.experimental import pallas as pl
from jax.experimental.pallas import tpu as pltpu

_MIB = 1024 * 1024
_TILE_TARGET_BYTES = 2 * _MIB   # ~2 MiB x-tiles: long DMAs, fits every TPU gen
_VMEM_SLACK_BYTES = 2 * _MIB


def _round_up(x, m):
    return ((x + m - 1) // m) * m


@functools.lru_cache(maxsize=None)
def _scoped_vmem_limit():
    """Generation-aware scoped-VMEM budget (v5e/v6e: 128 MiB phys, v7x: 64 MiB)."""
    cap = None
    try:
        cap = getattr(pltpu.get_tpu_info(), "vmem_capacity_bytes", None)
    except Exception:
        cap = None
    if not cap or cap <= 0:
        cap = 64 * _MIB                      # assume smallest (v7x per-core)
    return int(min(64 * _MIB, cap // 2))     # never request more than half phys


@functools.lru_cache(maxsize=None)
def _pick_row_tile(n, d, vmem_limit):
    """Rows per block for the single-pass kernel; 0 => use the two-pass path."""
    row_f32 = d * 4
    # Budget: double-buffered in + out blocks plus ~2 full-tile f32 temporaries
    # (~6x one tile), gamma/beta resident (x2 buffers), plus slack.
    budget = vmem_limit - 4 * d * 4 - _VMEM_SLACK_BYTES
    if budget <= 0:
        return 0
    tn_max = budget // (6 * row_f32)
    if tn_max < 1:
        return 0
    if n < 8:
        # Block's second-to-last dim must equal N when N < 8 ((8,128) tiling rule).
        return int(n) if tn_max >= n else 0
    tn_target = max(8, _TILE_TARGET_BYTES // row_f32)
    tn = min(n, tn_target, tn_max)
    tn = (tn // 8) * 8          # keep sublanes full; 0 => fall back to two-pass
    return int(tn)


# ----------------------------------------------------------------------------
# Single-pass kernel: whole feature dim resident, rows tiled & pipelined.
# ----------------------------------------------------------------------------
def _ln_rows_kernel(x_ref, g_ref, b_ref, o_ref, *, eps, inv_d):
    x = x_ref[...].astype(jnp.float32)                        # (tn, D)
    mean = jnp.sum(x, axis=-1, keepdims=True) * inv_d         # (tn, 1)
    mean_sq = jnp.sum(x * x, axis=-1, keepdims=True) * inv_d  # (tn, 1)
    var = jnp.maximum(mean_sq - mean * mean, 0.0)
    rstd = jax.lax.rsqrt(var + eps)
    y = (x - mean) * rstd
    o_ref[...] = (y * g_ref[...] + b_ref[...]).astype(o_ref.dtype)


def _layernorm_rows(x2, gamma2, beta2, eps, tn):
    n, d = x2.shape
    kernel = functools.partial(_ln_rows_kernel, eps=float(eps), inv_d=1.0 / d)
    return pl.pallas_call(
        kernel,
        out_shape=jax.ShapeDtypeStruct((n, d), x2.dtype),
        grid_spec=pltpu.PrefetchScalarGridSpec(
            num_scalar_prefetch=0,
            grid=(pl.cdiv(n, tn),),
            in_specs=[
                pl.BlockSpec((tn, d), lambda i: (i, 0)),
                pl.BlockSpec((1, d), lambda i: (0, 0)),   # gamma: resident
                pl.BlockSpec((1, d), lambda i: (0, 0)),   # beta : resident
            ],
            out_specs=pl.BlockSpec((tn, d), lambda i: (i, 0)),
        ),
        compiler_params=pltpu.CompilerParams(
            dimension_semantics=("parallel",),
            vmem_limit_bytes=_scoped_vmem_limit(),
        ),
    )(x2, gamma2, beta2)


# ----------------------------------------------------------------------------
# Two-pass fallback for very large D (row does not fit the VMEM budget).
# ----------------------------------------------------------------------------
def _ln_stats_kernel(x_ref, mean_ref, rstd_ref, sum_sc, sq_sc, *,
                     eps, inv_d, d_total, td):
    k = pl.program_id(1)

    @pl.when(k == 0)
    def _():
        sum_sc[...] = jnp.zeros_like(sum_sc)
        sq_sc[...] = jnp.zeros_like(sq_sc)

    x = x_ref[...].astype(jnp.float32)                         # (tn, td)
    col = jax.lax.broadcasted_iota(jnp.int32, x.shape, 1) + k * td
    x = jnp.where(col < d_total, x, 0.0)                       # mask ragged tail
    sum_sc[...] += jnp.sum(x, axis=-1, keepdims=True)
    sq_sc[...] += jnp.sum(x * x, axis=-1, keepdims=True)

    @pl.when(k == pl.num_programs(1) - 1)
    def _():
        mean = sum_sc[...] * inv_d
        var = jnp.maximum(sq_sc[...] * inv_d - mean * mean, 0.0)
        mean_ref[...] = mean
        rstd_ref[...] = jax.lax.rsqrt(var + eps)


def _ln_apply_kernel(x_ref, mean_ref, rstd_ref, g_ref, b_ref, o_ref):
    x = x_ref[...].astype(jnp.float32)
    y = (x - mean_ref[...]) * rstd_ref[...]
    o_ref[...] = (y * g_ref[...] + b_ref[...]).astype(o_ref.dtype)


def _layernorm_rows_two_pass(x2, gamma2, beta2, eps):
    n, d = x2.shape
    tn = n if n < 8 else 8
    td = min(64 * 1024, _round_up(d, 128))
    grid = (pl.cdiv(n, tn), pl.cdiv(d, td))
    cparams = pltpu.CompilerParams(
        dimension_semantics=("parallel", "arbitrary"),
        vmem_limit_bytes=_scoped_vmem_limit(),
    )

    stats_kernel = functools.partial(
        _ln_stats_kernel, eps=float(eps), inv_d=1.0 / d, d_total=d, td=td)
    mean, rstd = pl.pallas_call(
        stats_kernel,
        out_shape=(jax.ShapeDtypeStruct((n, 1), jnp.float32),
                   jax.ShapeDtypeStruct((n, 1), jnp.float32)),
        grid_spec=pltpu.PrefetchScalarGridSpec(
            num_scalar_prefetch=0,
            grid=grid,
            in_specs=[pl.BlockSpec((tn, td), lambda i, k: (i, k))],
            out_specs=[pl.BlockSpec((tn, 1), lambda i, k: (i, 0)),
                       pl.BlockSpec((tn, 1), lambda i, k: (i, 0))],
            scratch_shapes=[pltpu.VMEM((tn, 1), jnp.float32),
                            pltpu.VMEM((tn, 1), jnp.float32)],
        ),
        compiler_params=cparams,
    )(x2)

    return pl.pallas_call(
        _ln_apply_kernel,
        out_shape=jax.ShapeDtypeStruct((n, d), x2.dtype),
        grid_spec=pltpu.PrefetchScalarGridSpec(
            num_scalar_prefetch=0,
            grid=grid,
            in_specs=[
                pl.BlockSpec((tn, td), lambda i, k: (i, k)),
                pl.BlockSpec((tn, 1), lambda i, k: (i, 0)),
                pl.BlockSpec((tn, 1), lambda i, k: (i, 0)),
                pl.BlockSpec((1, td), lambda i, k: (0, k)),
                pl.BlockSpec((1, td), lambda i, k: (0, k)),
            ],
            out_specs=pl.BlockSpec((tn, td), lambda i, k: (i, k)),
        ),
        compiler_params=cparams,
    )(x2, mean, rstd, gamma2, beta2)


# ----------------------------------------------------------------------------
# Public wrapper / module
# ----------------------------------------------------------------------------
@functools.partial(jax.jit, static_argnums=(3,))
def fused_layernorm(x, gamma, beta, eps=1e-5):
    """LayerNorm over all dims except the first (batch), like the reference."""
    orig_shape = x.shape
    n = orig_shape[0]
    x2 = x.reshape(n, -1)
    d = x2.shape[1]
    gamma2 = gamma.reshape(1, d)
    beta2 = beta.reshape(1, d)
    if gamma2.dtype != jnp.float32:
        gamma2 = gamma2.astype(jnp.float32)
    if beta2.dtype != jnp.float32:
        beta2 = beta2.astype(jnp.float32)

    tn = _pick_row_tile(int(n), int(d), _scoped_vmem_limit())
    if tn > 0:
        out2 = _layernorm_rows(x2, gamma2, beta2, eps, tn)
    else:
        out2 = _layernorm_rows_two_pass(x2, gamma2, beta2, eps)
    return out2.reshape(orig_shape)


class ModelNew:
    """LayerNorm over all dims except batch, backed by Pallas TPU kernels."""

    def __init__(self, normalized_shape, eps=1e-5):
        self.normalized_shape = tuple(normalized_shape)
        self.eps = float(eps)
        # Matches nn.Parameter(torch.ones/zeros(..., dtype=float32)).
        self.weight = jnp.ones(self.normalized_shape, dtype=jnp.float32)
        self.bias = jnp.zeros(self.normalized_shape, dtype=jnp.float32)
        # Pre-flattened f32 params: avoids per-call reshape/cast work.
        self._gamma = self.weight.reshape(1, -1)
        self._beta = self.bias.reshape(1, -1)

    def __call__(self, x):
        return fused_layernorm(x, self._gamma, self._beta, self.eps)


if __name__ == "__main__":
    key = jax.random.PRNGKey(0)
    N, C, H, W = 2, 4, 16, 16
    kx, kg, kb = jax.random.split(key, 3)
    x = jax.random.normal(kx, (N, C, H, W), dtype=jnp.float32)

    model = ModelNew(normalized_shape=(C, H, W), eps=1e-5)
    y = jax.block_until_ready(model(x))

    def ref_ln(xv, g, b, eps):
        nb = xv.shape[0]
        xf = xv.reshape(nb, -1).astype(jnp.float32)
        mean = jnp.mean(xf, axis=-1, keepdims=True)
        var = jnp.mean((xf - mean) ** 2, axis=-1, keepdims=True)
        yf = (xf - mean) / jnp.sqrt(var + eps)
        yf = yf * g.reshape(1, -1) + b.reshape(1, -1)
        return yf.reshape(xv.shape)

    ref0 = ref_ln(x, model.weight, model.bias, 1e-5)
    assert y.shape == x.shape and y.dtype == x.dtype
    assert float(jnp.max(jnp.abs(y - ref0))) < 2e-4

    # Affine check with non-trivial gamma/beta (same kernel path; catches
    # gamma/beta broadcast bugs the ones/zeros init would hide).
    gamma = jax.random.normal(kg, (C, H, W), dtype=jnp.float32)
    beta = jax.random.normal(kb, (C, H, W), dtype=jnp.float32)
    y2 = jax.block_until_ready(fused_layernorm(x, gamma, beta, 1e-5))
    ref2 = ref_ln(x, gamma, beta, 1e-5)
    assert float(jnp.max(jnp.abs(y2 - ref2))) < 2e-4

    # Taller-batch check (N >= 8 path: multi-row tiles, row axis pipelined).
    x3 = jax.random.normal(kx, (32, C, H, W), dtype=jnp.float32)
    y3 = jax.block_until_ready(fused_layernorm(x3, gamma, beta, 1e-5))
    ref3 = ref_ln(x3, gamma, beta, 1e-5)
    assert float(jnp.max(jnp.abs(y3 - ref3))) < 2e-4

    print("KERNEL_OK")
</pallas_src>

<mosaic_0001>
module attributes {stable_mosaic.version = 11 : i64} {
  func.func @_ln_rows_kernel(%arg0: i32, %arg1: memref<2x1024xf32, #tpu.memory_space<vmem>>, %arg2: memref<1x1024xf32, #tpu.memory_space<vmem>>, %arg3: memref<1x1024xf32, #tpu.memory_space<vmem>>, %arg4: memref<2x1024xf32, #tpu.memory_space<vmem>>) attributes {dimension_semantics = [#tpu.dimension_semantics<parallel>], iteration_bounds = array<i64: 1>, scalar_prefetch = 0 : i64, scratch_operands = 0 : i64, tpu.core_type = #tpu.core_type<tc>, window_params = [{transform_indices = @transform_0, window_bounds = array<i64: 2, 1024>}, {pipeline_mode = #tpu.pipeline_mode<synchronous>, transform_indices = @transform_1, window_bounds = array<i64: 1, 1024>}, {pipeline_mode = #tpu.pipeline_mode<synchronous>, transform_indices = @transform_2, window_bounds = array<i64: 1, 1024>}, {transform_indices = @transform_3, window_bounds = array<i64: 2, 1024>}]} {
    %c0 = arith.constant 0 : index
    %c0_0 = arith.constant 0 : index
    %0 = vector.load %arg1[%c0, %c0_0] : memref<2x1024xf32, #tpu.memory_space<vmem>>, vector<2x1024xf32>
    %cst = arith.constant dense<0.000000e+00> : vector<2xf32>
    %1 = vector.multi_reduction <add>, %0, %cst [1] : vector<2x1024xf32> to vector<2xf32>
    %2 = vector.shape_cast %1 : vector<2xf32> to vector<2x1xf32>
    %cst_1 = arith.constant 9.765625E-4 : f32
    %3 = vector.broadcast %cst_1 : f32 to vector<2x1xf32>
    %4 = arith.mulf %2, %3 : vector<2x1xf32>
    %5 = arith.mulf %0, %0 : vector<2x1024xf32>
    %cst_2 = arith.constant dense<0.000000e+00> : vector<2xf32>
    %6 = vector.multi_reduction <add>, %5, %cst_2 [1] : vector<2x1024xf32> to vector<2xf32>
    %7 = vector.shape_cast %6 : vector<2xf32> to vector<2x1xf32>
    %cst_3 = arith.constant 9.765625E-4 : f32
    %8 = vector.broadcast %cst_3 : f32 to vector<2x1xf32>
    %9 = arith.mulf %7, %8 : vector<2x1xf32>
    %10 = arith.mulf %4, %4 : vector<2x1xf32>
    %11 = arith.subf %9, %10 : vector<2x1xf32>
    %cst_4 = arith.constant 0.000000e+00 : f32
    %12 = vector.broadcast %cst_4 : f32 to vector<2x1xf32>
    %13 = arith.maximumf %11, %12 : vector<2x1xf32>
    %cst_5 = arith.constant 9.99999974E-6 : f32
    %14 = vector.broadcast %cst_5 : f32 to vector<2x1xf32>
    %15 = arith.addf %13, %14 : vector<2x1xf32>
    %16 = math.rsqrt %15 : vector<2x1xf32>
    %17 = vector.broadcast %4 : vector<2x1xf32> to vector<2x1024xf32>
    %18 = arith.subf %0, %17 : vector<2x1024xf32>
    %19 = vector.broadcast %16 : vector<2x1xf32> to vector<2x1024xf32>
    %20 = arith.mulf %18, %19 : vector<2x1024xf32>
    %c0_6 = arith.constant 0 : index
    %c0_7 = arith.constant 0 : index
    %21 = vector.load %arg2[%c0_6, %c0_7] : memref<1x1024xf32, #tpu.memory_space<vmem>>, vector<1x1024xf32>
    %22 = vector.broadcast %21 : vector<1x1024xf32> to vector<2x1024xf32>
    %23 = arith.mulf %20, %22 : vector<2x1024xf32>
    %c0_8 = arith.constant 0 : index
    %c0_9 = arith.constant 0 : index
    %24 = vector.load %arg3[%c0_8, %c0_9] : memref<1x1024xf32, #tpu.memory_space<vmem>>, vector<1x1024xf32>
    %25 = vector.broadcast %24 : vector<1x1024xf32> to vector<2x1024xf32>
    %26 = arith.addf %23, %25 : vector<2x1024xf32>
    %c0_10 = arith.constant 0 : index
    %c0_11 = arith.constant 0 : index
    %27 = vector.load %arg4[%c0_10, %c0_11] : memref<2x1024xf32, #tpu.memory_space<vmem>>, vector<2x1024xf32>
    tpu.vector_store %arg4[%c0_10, %c0_11], %26 {strides = array<i32>} : memref<2x1024xf32, #tpu.memory_space<vmem>>, vector<2x1024xf32>,
    return
  }
  func.func @transform_0(%arg0: i32) -> (i32, i32) {
    %c0_i32 = arith.constant 0 : i32
    %c0_i32_0 = arith.constant 0 : i32
    return %arg0, %c0_i32 : i32, i32
  }
  func.func @transform_1(%arg0: i32) -> (i32, i32) {
    %c0_i32 = arith.constant 0 : i32
    %c0_i32_0 = arith.constant 0 : i32
    %c0_i32_1 = arith.constant 0 : i32
    return %c0_i32, %c0_i32_0 : i32, i32
  }
  func.func @transform_2(%arg0: i32) -> (i32, i32) {
    %c0_i32 = arith.constant 0 : i32
    %c0_i32_0 = arith.constant 0 : i32
    %c0_i32_1 = arith.constant 0 : i32
    return %c0_i32, %c0_i32_0 : i32, i32
  }
  func.func @transform_3(%arg0: i32) -> (i32, i32) {
    %c0_i32 = arith.constant 0 : i32
    %c0_i32_0 = arith.constant 0 : i32
    return %arg0, %c0_i32 : i32, i32
  }
}

</mosaic_0001>

<bundles_post_ra>
// kernel: fused_layernorm.1
= control target key start
LH: loop header
LB: loop body
LE: loop exit
PB: predicated region body
PF: predicated region fallthrough
CT: control target
= control target key end

     0   :  { %v22_v0 = vlaneseq  ;;  %v326_v2 = vmov 1983009808   ;;  %vm60_vm0 = vcmask 1041408   ;;  %s428_s0 = inlined_call_operand.vmem [shape: f32[2,1024], index: 0, kind: input, shape index: {}]   ;;  %s429_s1 = inlined_call_operand.vmem [shape: f32[1,1024], index: 1, kind: input, shape index: {}]   ;;  %s430_s2 = inlined_call_operand.vmem [shape: f32[1,1024], index: 2, kind: input, shape index: {}]   ;;  %s431_s3 = inlined_call_operand.vmem [shape: f32[2,1024], index: 3, kind: output, shape index: {}]  }
   0x1   :  { %v351_v1 = vld [vmem:[%s428_s0] sm:$0xff]  ;;  %v20_v3 = vunpack.c.l.s4 %v326_v2  ;;  %v365_v10 = vld [vmem:[%s428_s0 + $0x8] sm:$0xff] }
   0x2   :  { %v353_v4 = vshrl.u32 %v22_v0, 7  ;;  %v79_v5 = vmul.f32 %v351_v1, %v351_v1  ;;  %v18_v6 = vcombine.high %v351_v1, %v351_v1  ;;  %v80_v13 = vmul.f32 %v365_v10, %v365_v10  ;;  %v170_v0 = vld [vmem:[%s429_s1] sm:$0xff] }
   0x3   :  { %v21_v7 = vunpack.c.0.s8 %v20_v3  ;;  %v35_v18 = vcombine.high %v365_v10, %v365_v10 }
   0x4   :  { %v83_v8 = vcombine.high %v79_v5, %v79_v5  ;;  %v100_v23 = vcombine.high %v80_v13, %v80_v13  ;;  %v174_v60 = vsub.s32 0, %v353_v4  ;;  %v178_v61 = vsub.s32 1, %v353_v4 }
   0x5   :  { %v360_v9 = vsub.s32 %v21_v7, %v353_v4  ;;  %v182_v62 = vsub.s32 2, %v353_v4  ;;  %v186_v63 = vsub.s32 3, %v353_v4  ;;  %v190_v2 = vsub.s32 4, %v353_v4  ;;  %v242_v7 = vld [vmem:[%s430_s2] sm:$0xff] }
   0x6   :  { %v194_v3 = vsub.s32 5, %v353_v4 }
   0x7   :  { %v25_v11 = vrot.slane %v351_v1, %v360_v9  ;;  %v32_v12 = vrot.slane %v18_v6, %v360_v9  ;;  %v90_v14 = vrot.slane %v79_v5, %v360_v9  ;;  %v97_v15 = vrot.slane %v83_v8, %v360_v9 }
   0x8   :  { %v42_v19 = vrot.slane %v365_v10, %v360_v9  ;;  %v107_v27 = vrot.slane %v80_v13, %v360_v9  ;;  %v49_v28 = vrot.slane %v35_v18, %v360_v9  ;;  %v114_v38 = vrot.slane %v100_v23, %v360_v9 }
   0x9   :  { %v33_v16 = vcombine.high %v25_v11, %v25_v11  ;;  %v34_v17 = vcombine.high %v32_v12, %v32_v12  ;;  %v61_v20 = vsel %vm60_vm0, %v25_v11, 0.0  ;;  %v64_v22 = vsel %vm60_vm0, %v32_v12, 0.0 }
   0xa   :  { %v98_v25 = vcombine.high %v90_v14, %v90_v14  ;;  %v99_v26 = vcombine.high %v97_v15, %v97_v15  ;;  %v50_v29 = vcombine.high %v42_v19, %v42_v19  ;;  %v125_v31 = vsel %vm60_vm0, %v90_v14, 0.0 }
   0xb   :  { %v62_v21 = vsel %vm60_vm0, %v33_v16, 0.0  ;;  %v66_v30 = vsel %vm60_vm0, %v34_v17, 0.0  ;;  %v128_v34 = vsel %vm60_vm0, %v97_v15, 0.0  ;;  %v68_v35 = vsel %vm60_vm0, %v42_v19, 0.0 }
   0xc   :  { %v63_v24 = vadd.f32 %v62_v21, %v61_v20  ;;  %v126_v33 = vsel %vm60_vm0, %v98_v25, 0.0  ;;  %v115_v39 = vcombine.high %v107_v27, %v107_v27  ;;  %v130_v40 = vsel %vm60_vm0, %v99_v26, 0.0 }
   0xd   :  { %v127_v36 = vadd.f32 %v126_v33, %v125_v31  ;;  %v51_v41 = vcombine.high %v49_v28, %v49_v28  ;;  %v70_v42 = vsel %vm60_vm0, %v50_v29, 0.0  ;;  %v132_v45 = vsel %vm60_vm0, %v107_v27, 0.0 }
   0xe   :  { %v65_v32 = vadd.f32 %v64_v22, %v63_v24  ;;  %v72_v46 = vsel %vm60_vm0, %v49_v28, 0.0  ;;  %v116_v49 = vcombine.high %v114_v38, %v114_v38  ;;  %v134_v50 = vsel %vm60_vm0, %v115_v39, 0.0 }
   0xf   :  { %v129_v43 = vadd.f32 %v128_v34, %v127_v36  ;;  %v74_v51 = vsel %vm60_vm0, %v51_v41, 0.0  ;;  %v136_v54 = vsel %vm60_vm0, %v114_v38, 0.0  ;;  %v198_v5 = vsub.s32 6, %v353_v4 }
  0x10   :  { %v67_v37 = vadd.f32 %v66_v30, %v65_v32  ;;  %v138_v57 = vsel %vm60_vm0, %v116_v49, 0.0  ;;  %v202_v6 = vsub.s32 7, %v353_v4  ;;  %v175_v8 = vrot.slane %v170_v0, %v174_v60 }
  0x11   :  { %v131_v47 = vadd.f32 %v130_v40, %v129_v43  ;;  %v179_v11 = vrot.slane %v170_v0, %v178_v61  ;;  %v183_v12 = vrot.slane %v170_v0, %v182_v62  ;;  %v187_v13 = vrot.slane %v170_v0, %v186_v63 }
  0x12   :  { %v69_v44 = vadd.f32 %v68_v35, %v67_v37  ;;  %v191_v14 = vrot.slane %v170_v0, %v190_v2  ;;  %v195_v15 = vrot.slane %v170_v0, %v194_v3  ;;  %v199_v16 = vrot.slane %v170_v0, %v198_v5 }
  0x13   :  { %v133_v52 = vadd.f32 %v132_v45, %v131_v47  ;;  %v203_v17 = vrot.slane %v170_v0, %v202_v6  ;;  %v204_v18 = vcombine.low %v175_v8, %v179_v11  ;;  %v205_v19 = vcombine.low %v183_v12, %v187_v13 }
  0x14   :  { %v71_v48 = vadd.f32 %v70_v42, %v69_v44  ;;  %v247_v20 = vrot.slane %v242_v7, %v174_v60  ;;  %v251_v21 = vrot.slane %v242_v7, %v178_v61  ;;  %v221_v22 = vcombine.low %v191_v14, %v195_v15 }
  0x15   :  { %v135_v55 = vadd.f32 %v134_v50, %v133_v52  ;;  %v222_v23 = vcombine.low %v199_v16, %v203_v17  ;;  %v255_v24 = vrot.slane %v242_v7, %v182_v62  ;;  %v259_v25 = vrot.slane %v242_v7, %v186_v63 }
  0x16   :  { %v73_v53 = vadd.f32 %v72_v46, %v71_v48  ;;  %v212_v26 = vrot.slane %v204_v18, %v360_v9  ;;  %v219_v27 = vrot.slane %v205_v19, %v360_v9  ;;  %v263_v28 = vrot.slane %v242_v7, %v190_v2 }
  0x17   :  { %v137_v58 = vadd.f32 %v136_v54, %v135_v55  ;;  %v267_v29 = vrot.slane %v242_v7, %v194_v3  ;;  %v229_v30 = vrot.slane %v221_v22, %v360_v9  ;;  %v236_v31 = vrot.slane %v222_v23, %v360_v9 }
  0x18   :  { %v75_v56 = vadd.f32 %v74_v51, %v73_v53  ;;  %v271_v32 = vrot.slane %v242_v7, %v198_v5  ;;  %v275_v33 = vrot.slane %v242_v7, %v202_v6  ;;  %v220_v34 = vcombine.low %v212_v26, %v219_v27 }
  0x19   :  { %v139_v59 = vadd.f32 %v138_v57, %v137_v58  ;;  %v276_v35 = vcombine.low %v247_v20, %v251_v21  ;;  %v277_v36 = vcombine.low %v255_v24, %v259_v25  ;;  %v293_v37 = vcombine.low %v263_v28, %v267_v29 }
  0x1a   :  { %76 = vadd.xlane.f32.xlu0 %v75_v56  ;;  %v237_v38 = vcombine.low %v229_v30, %v236_v31  ;;  %v294_v39 = vcombine.low %v271_v32, %v275_v33  ;;  %v327_v52 = vmov 269488144  }
  0x1b   :  { %v284_v40 = vrot.slane %v276_v35, %v360_v9  ;;  %v291_v41 = vrot.slane %v277_v36, %v360_v9  ;;  %v301_v42 = vrot.slane %v293_v37, %v360_v9  ;;  %v150_v53 = vunpack.c.l.s4 %v327_v52 }
  0x1c   :  { %v308_v43 = vrot.slane %v294_v39, %v360_v9 }
  0x1d   :  { %v292_v44 = vcombine.low %v284_v40, %v291_v41  ;;  %v151_v56 = vunpack.c.0.s8 %v150_v53 }
  0x1e   :  { %140 = vadd.xlane.f32.xlu0 %v139_v59  ;;  %v309_v45 = vcombine.low %v301_v42, %v308_v43 }
  0x1f   :  { %v154_v57 = vsub.s32 %v151_v56, %v353_v4 }
  0xa7   :  { %v77_v46 = vpop.xlane.xlu0 %76 }
  0xa8   :  { %v78_v47 = vmul.f32 0.0009765625, %v77_v46 }
  0xaa   :  { %v143_v49 = vmul.f32 %v78_v47, %v78_v47  ;;  %v155_v58 = vrot.slane %v78_v47, %v154_v57 }
  0xab   :  { %v141_v48 = vpop.xlane.xlu0 %140 }
  0xac   :  { %v142_v50 = vmul.f32 0.0009765625, %v141_v48  ;;  %v157_v9 = vsub.f32 %v351_v1, %v155_v58  ;;  %v158_v60 = vsub.f32 %v365_v10, %v155_v58 }
  0xae   :  { %v144_v51 = vsub.f32 %v142_v50, %v143_v49 }
  0xb0   :  { %v145_v54 = vmax.f32 %v144_v51, 0.0 }
  0xb2   :  { %v146_v55 = vadd.f32 1e-05, %v145_v54 }
  0xb4   :  { %324 = vrsqrt.f32 %v146_v55 }
  0xbe   :  { %v325_v59 = vpop.eup %324 }
  0xbf   :  { %v166_v61 = vrot.slane %v325_v59, %v154_v57 }
  0xc1   :  { %v168_v62 = vmul.f32 %v166_v61, %v157_v9  ;;  %v169_v63 = vmul.f32 %v166_v61, %v158_v60 }
  0xc3   :  { %v240_v0 = vmul.f32 %v220_v34, %v168_v62  ;;  %v241_v2 = vmul.f32 %v237_v38, %v169_v63 }
  0xc5   :  { %v312_v3 = vadd.f32 %v292_v44, %v240_v0  ;;  %v313_v5 = vadd.f32 %v309_v45, %v241_v2 }
  0xc7   :  { %314 = vst [vmem:[%s431_s3] sm:$0xff] %v312_v3  ;;  %315 = vst [vmem:[%s431_s3 + $0x8] sm:$0xff] %v313_v5 }

</bundles_post_ra>
